<compile_context>
chip_gen: v6e
topology: v6e:2x2x1
jax: 0.10.0
libtpu: 0.0.40
codegen_flags: <defaults>
</compile_context>

<pallas_src>
import math
import jax
import jax.numpy as jnp
from jax.experimental import pallas as pl
from jax.experimental.pallas import tpu as pltpu

OBS_PAD = 128                  # fc1 contraction padded to one 128-lane vreg
HID = 256                      # hidden width == slab lane width
PAD_HEAD = 128                 # each head (mean / log_std) padded to 128 lanes
BIAS_ROWS = 8                  # sublane-aligned bias block (rows 3..7 unused)
SLAB_ROWS = OBS_PAD + 2 * HID + BIAS_ROWS      # 648 (multiple of 8)
_W1_OFF = 0
_W2_OFF = OBS_PAD              # 128
_WH_OFF = OBS_PAD + HID        # 384
_B_OFF = OBS_PAD + 2 * HID     # 640

LOG_STD_MIN = -5.0
LOG_STD_MAX = 2.0


# ----------------------------- Pallas kernel --------------------------------
def noisy_sac_actor_kernel(x_ref, slab_ref, out_ref):
    x = x_ref[...]                                         # (tb, 128) bf16

    # Static, sublane-aligned slices of the resident parameter slab.
    w1 = slab_ref[_W1_OFF:_W1_OFF + OBS_PAD, :]            # (128, 256) bf16
    w2 = slab_ref[_W2_OFF:_W2_OFF + HID, :]                # (256, 256) bf16
    wh = slab_ref[_WH_OFF:_WH_OFF + HID, :]                # (256, 256) bf16
    bias = slab_ref[_B_OFF:, :].astype(jnp.float32)        # (8, 256)   f32
    b1, b2, bh = bias[0:1, :], bias[1:2, :], bias[2:3, :]

    # bf16 MXU matmuls, f32 accumulation, f32 elementwise.
    h = jnp.dot(x, w1, preferred_element_type=jnp.float32) + b1
    h = jnp.maximum(h, 0.0).astype(jnp.bfloat16)
    h = jnp.dot(h, w2, preferred_element_type=jnp.float32) + b2
    h = jnp.maximum(h, 0.0).astype(jnp.bfloat16)
    y = jnp.dot(h, wh, preferred_element_type=jnp.float32) + bh    # (tb, 256)

    # Mean half passes through; tanh + rescale only on the log_std half.
    # Both stores are 128-lane aligned -> unmasked vst.
    out_ref[:, :PAD_HEAD] = y[:, :PAD_HEAD]
    t = jnp.tanh(y[:, PAD_HEAD:])
    out_ref[:, PAD_HEAD:] = LOG_STD_MIN + 0.5 * (LOG_STD_MAX - LOG_STD_MIN) * (t + 1.0)


def noisy_sac_actor_forward(x, slab, act_dim, *, batch_tile=256):
    """x: (B, obs_dim) f32, slab: (648, 256) bf16. Returns (mean, log_std)."""
    B, obs_dim = x.shape
    assert obs_dim <= OBS_PAD and act_dim <= PAD_HEAD

    if B <= batch_tile:
        tb = max(8, ((B + 7) // 8) * 8)        # single resident tile
        n_tiles = 1
    else:
        tb = batch_tile                        # multiple of 8 by construction
        n_tiles = pl.cdiv(B, tb)
    B_pad = tb * n_tiles

    x_pad = jnp.zeros((B_pad, OBS_PAD), jnp.bfloat16)
    x_pad = x_pad.at[:B, :obs_dim].set(x.astype(jnp.bfloat16))

    out = pl.pallas_call(
        noisy_sac_actor_kernel,
        out_shape=jax.ShapeDtypeStruct((B_pad, 2 * PAD_HEAD), jnp.float32),
        grid=(n_tiles,),
        in_specs=[
            pl.BlockSpec((tb, OBS_PAD), lambda i: (i, 0)),       # batch tile
            pl.BlockSpec((SLAB_ROWS, HID), lambda i: (0, 0)),    # weights: loaded once, resident
        ],
        out_specs=pl.BlockSpec((tb, 2 * PAD_HEAD), lambda i: (i, 0)),
        compiler_params=pltpu.CompilerParams(
            dimension_semantics=("parallel",)),   # v7x: shard batch tiles over both TCs
    )(x_pad, slab)

    mean = out[:B, :act_dim]
    log_std = out[:B, PAD_HEAD:PAD_HEAD + act_dim]
    return mean, log_std


# --------------------------- Parameter construction --------------------------
def _scale_noise(key, size):
    x = jax.random.normal(key, (size,), dtype=jnp.float32)
    return jnp.sign(x) * jnp.sqrt(jnp.abs(x))


def _noisy_linear_effective(key, in_features, out_features, std_init):
    """Effective (noise-fused) weight/bias of a training-mode NoisyLinear.
    Returns W_eff as (in, out) and b_eff as (out,) so x @ W_eff + b_eff
    == F.linear(x, W_pt, b_pt)."""
    k_wmu, k_bmu, k_in, k_out = jax.random.split(key, 4)
    mu_range = 1.0 / math.sqrt(in_features)

    w_mu = jax.random.uniform(
        k_wmu, (out_features, in_features), jnp.float32, -mu_range, mu_range)
    w_sigma = jnp.full((out_features, in_features),
                       std_init / math.sqrt(in_features), jnp.float32)
    b_mu = jax.random.uniform(
        k_bmu, (out_features,), jnp.float32, -mu_range, mu_range)
    b_sigma = jnp.full((out_features,),
                       std_init / math.sqrt(out_features), jnp.float32)

    eps_in = _scale_noise(k_in, in_features)
    eps_out = _scale_noise(k_out, out_features)
    w_eps = jnp.outer(eps_out, eps_in)            # (out, in)

    w_eff = (w_mu + w_sigma * w_eps).T            # (in, out)
    b_eff = b_mu + b_sigma * eps_out              # (out,)
    return w_eff, b_eff


def _linear_params(key, in_features, out_features):
    """Plain nn.Linear-style params, W as (in, out)."""
    k_w, k_b = jax.random.split(key)
    bound = 1.0 / math.sqrt(in_features)
    w = jax.random.uniform(k_w, (in_features, out_features), jnp.float32, -bound, bound)
    b = jax.random.uniform(k_b, (out_features,), jnp.float32, -bound, bound)
    return w, b


def build_packed_params(key, obs_dim, act_dim, std_init=10.0):
    """Build the single bf16 parameter slab plus bf16-rounded raw params for the
    pure-JAX reference (so the reference sees exactly the slab's values)."""
    assert obs_dim <= OBS_PAD and act_dim <= PAD_HEAD
    k1, k2, km, ks = jax.random.split(key, 4)

    w1, b1 = _noisy_linear_effective(k1, obs_dim, HID, std_init)   # (obs,256),(256,)
    w2, b2 = _noisy_linear_effective(k2, HID, HID, std_init)       # (256,256),(256,)
    wm, bm = _linear_params(km, HID, act_dim)                      # (256,act),(act,)
    ws, bs = _linear_params(ks, HID, act_dim)

    slab = jnp.zeros((SLAB_ROWS, HID), jnp.float32)
    slab = slab.at[_W1_OFF:_W1_OFF + obs_dim, :].set(w1)   # rows obs_dim..127 stay zero
    slab = slab.at[_W2_OFF:_W2_OFF + HID, :].set(w2)
    slab = slab.at[_WH_OFF:_WH_OFF + HID, :act_dim].set(wm)
    slab = slab.at[_WH_OFF:_WH_OFF + HID, PAD_HEAD:PAD_HEAD + act_dim].set(ws)
    slab = slab.at[_B_OFF + 0, :].set(b1)
    slab = slab.at[_B_OFF + 1, :].set(b2)
    slab = slab.at[_B_OFF + 2, :act_dim].set(bm)
    slab = slab.at[_B_OFF + 2, PAD_HEAD:PAD_HEAD + act_dim].set(bs)
    slab = slab.astype(jnp.bfloat16)

    q = lambda a: a.astype(jnp.bfloat16).astype(jnp.float32)
    raw = (q(w1), q(b1), q(w2), q(b2), q(wm), q(bm), q(ws), q(bs))
    return slab, raw


# --------------------------------- Reference ---------------------------------
def reference_forward(x, raw):
    """Pure-JAX reference mimicking the kernel's bf16 matmul inputs / f32 accum."""
    w1, b1, w2, b2, wm, bm, ws, bs = raw
    q = lambda a: a.astype(jnp.bfloat16).astype(jnp.float32)
    h = jnp.maximum(q(x) @ w1 + b1, 0.0)
    h = jnp.maximum(q(h) @ w2 + b2, 0.0)
    h = q(h)
    mean = h @ wm + bm
    log_std = jnp.tanh(h @ ws + bs)
    log_std = LOG_STD_MIN + 0.5 * (LOG_STD_MAX - LOG_STD_MIN) * (log_std + 1.0)
    return mean, log_std


# ------------------------------------ Main ------------------------------------
if __name__ == "__main__":
    key = jax.random.PRNGKey(0)
    k_x, k_p, k_xb = jax.random.split(key, 3)

    # Small continuous-control-like env: obs_dim=8, act_dim=2.
    B, OBS_DIM, ACT_DIM = 4, 8, 2
    x = jax.random.normal(k_x, (B, OBS_DIM), dtype=jnp.float32)
    slab, raw = build_packed_params(k_p, OBS_DIM, ACT_DIM, std_init=10.0)

    # Small-batch path: single resident block (grid=(1,)).
    mean, log_std = noisy_sac_actor_forward(x, slab, ACT_DIM)
    mean = jax.block_until_ready(mean)
    log_std = jax.block_until_ready(log_std)
    mean_ref, log_std_ref = reference_forward(x, raw)

    assert mean.shape == (B, ACT_DIM) and log_std.shape == (B, ACT_DIM)
    assert jnp.allclose(mean, mean_ref, rtol=2e-2, atol=5e-2), "mean mismatch (small batch)"
    assert jnp.allclose(log_std, log_std_ref, rtol=2e-2, atol=1e-1), "log_std mismatch (small batch)"

    # Batched / rollout path: grid over batch tiles, weight slab fetched once
    # (constant index_map) and "parallel" batch axis for v7x dual-TC sharding.
    BB = 272
    xb = jax.random.normal(k_xb, (BB, OBS_DIM), dtype=jnp.float32)
    mean_b, log_std_b = noisy_sac_actor_forward(xb, slab, ACT_DIM, batch_tile=128)
    mean_b = jax.block_until_ready(mean_b)
    log_std_b = jax.block_until_ready(log_std_b)
    mean_bref, log_std_bref = reference_forward(xb, raw)

    assert mean_b.shape == (BB, ACT_DIM) and log_std_b.shape == (BB, ACT_DIM)
    assert jnp.allclose(mean_b, mean_bref, rtol=2e-2, atol=5e-2), "mean mismatch (batched)"
    assert jnp.allclose(log_std_b, log_std_bref, rtol=2e-2, atol=1e-1), "log_std mismatch (batched)"

    print("KERNEL_OK")
</pallas_src>

<mosaic_0001>
module attributes {stable_mosaic.version = 11 : i64} {
  func.func @noisy_sac_actor_kernel(%arg0: i32, %arg1: memref<8x128xbf16, #tpu.memory_space<vmem>>, %arg2: memref<648x256xbf16, #tpu.memory_space<vmem>>, %arg3: memref<8x256xf32, #tpu.memory_space<vmem>>) attributes {dimension_semantics = [#tpu.dimension_semantics<parallel>], iteration_bounds = array<i64: 1>, scalar_prefetch = 0 : i64, scratch_operands = 0 : i64, tpu.core_type = #tpu.core_type<tc>, window_params = [{transform_indices = @transform_0, window_bounds = array<i64: 8, 128>}, {pipeline_mode = #tpu.pipeline_mode<synchronous>, transform_indices = @transform_1, window_bounds = array<i64: 648, 256>}, {transform_indices = @transform_2, window_bounds = array<i64: 8, 256>}]} {
    %c0 = arith.constant 0 : index
    %c0_0 = arith.constant 0 : index
    %0 = vector.load %arg1[%c0, %c0_0] : memref<8x128xbf16, #tpu.memory_space<vmem>>, vector<8x128xbf16>
    %c0_1 = arith.constant 0 : index
    %c0_2 = arith.constant 0 : index
    %1 = vector.load %arg2[%c0_1, %c0_2] : memref<648x256xbf16, #tpu.memory_space<vmem>>, vector<128x256xbf16>
    %c128 = arith.constant 128 : index
    %c0_3 = arith.constant 0 : index
    %2 = vector.load %arg2[%c128, %c0_3] : memref<648x256xbf16, #tpu.memory_space<vmem>>, vector<256x256xbf16>
    %c384 = arith.constant 384 : index
    %c0_4 = arith.constant 0 : index
    %3 = vector.load %arg2[%c384, %c0_4] : memref<648x256xbf16, #tpu.memory_space<vmem>>, vector<256x256xbf16>
    %c640 = arith.constant 640 : index
    %c0_5 = arith.constant 0 : index
    %4 = vector.load %arg2[%c640, %c0_5] : memref<648x256xbf16, #tpu.memory_space<vmem>>, vector<8x256xbf16>
    %5 = arith.extf %4 : vector<8x256xbf16> to vector<8x256xf32>
    %6 = vector.extract_strided_slice %5 {offsets = [0, 0], sizes = [1, 256], strides = [1, 1]} : vector<8x256xf32> to vector<1x256xf32>
    %7 = vector.extract_strided_slice %5 {offsets = [1, 0], sizes = [1, 256], strides = [1, 1]} : vector<8x256xf32> to vector<1x256xf32>
    %8 = vector.extract_strided_slice %5 {offsets = [2, 0], sizes = [1, 256], strides = [1, 1]} : vector<8x256xf32> to vector<1x256xf32>
    %cst = arith.constant dense<0.000000e+00> : vector<8x256xf32>
    %9 = tpu.matmul %0, %1, %cst {dimension_numbers = #tpu.dot_dimension_numbers<[1], [0], [0], [1], [0, 0, 1, 1], [], []>} : vector<8x128xbf16>, vector<128x256xbf16>, vector<8x256xf32> -> vector<8x256xf32>
    %10 = vector.broadcast %6 : vector<1x256xf32> to vector<8x256xf32>
    %11 = arith.addf %9, %10 : vector<8x256xf32>
    %cst_6 = arith.constant 0.000000e+00 : f32
    %12 = vector.broadcast %cst_6 : f32 to vector<8x256xf32>
    %13 = arith.maximumf %11, %12 : vector<8x256xf32>
    %14 = arith.truncf %13 : vector<8x256xf32> to vector<8x256xbf16>
    %cst_7 = arith.constant dense<0.000000e+00> : vector<8x256xf32>
    %15 = tpu.matmul %14, %2, %cst_7 {dimension_numbers = #tpu.dot_dimension_numbers<[1], [0], [0], [1], [0, 0, 1, 1], [], []>} : vector<8x256xbf16>, vector<256x256xbf16>, vector<8x256xf32> -> vector<8x256xf32>
    %16 = vector.broadcast %7 : vector<1x256xf32> to vector<8x256xf32>
    %17 = arith.addf %15, %16 : vector<8x256xf32>
    %cst_8 = arith.constant 0.000000e+00 : f32
    %18 = vector.broadcast %cst_8 : f32 to vector<8x256xf32>
    %19 = arith.maximumf %17, %18 : vector<8x256xf32>
    %20 = arith.truncf %19 : vector<8x256xf32> to vector<8x256xbf16>
    %cst_9 = arith.constant dense<0.000000e+00> : vector<8x256xf32>
    %21 = tpu.matmul %20, %3, %cst_9 {dimension_numbers = #tpu.dot_dimension_numbers<[1], [0], [0], [1], [0, 0, 1, 1], [], []>} : vector<8x256xbf16>, vector<256x256xbf16>, vector<8x256xf32> -> vector<8x256xf32>
    %22 = vector.broadcast %8 : vector<1x256xf32> to vector<8x256xf32>
    %23 = arith.addf %21, %22 : vector<8x256xf32>
    %24 = vector.extract_strided_slice %23 {offsets = [0, 0], sizes = [8, 128], strides = [1, 1]} : vector<8x256xf32> to vector<8x128xf32>
    %c0_10 = arith.constant 0 : index
    %c0_11 = arith.constant 0 : index
    %25 = vector.load %arg3[%c0_10, %c0_11] : memref<8x256xf32, #tpu.memory_space<vmem>>, vector<8x128xf32>
    tpu.vector_store %arg3[%c0_10, %c0_11], %24 {strides = array<i32>} : memref<8x256xf32, #tpu.memory_space<vmem>>, vector<8x128xf32>,
    %26 = vector.extract_strided_slice %23 {offsets = [0, 128], sizes = [8, 128], strides = [1, 1]} : vector<8x256xf32> to vector<8x128xf32>
    %27 = math.tanh %26 : vector<8x128xf32>
    %cst_12 = arith.constant 1.000000e+00 : f32
    %28 = vector.broadcast %cst_12 : f32 to vector<8x128xf32>
    %29 = arith.addf %27, %28 : vector<8x128xf32>
    %cst_13 = arith.constant 3.500000e+00 : f32
    %30 = vector.broadcast %cst_13 : f32 to vector<8x128xf32>
    %31 = arith.mulf %30, %29 : vector<8x128xf32>
    %cst_14 = arith.constant -5.000000e+00 : f32
    %32 = vector.broadcast %cst_14 : f32 to vector<8x128xf32>
    %33 = arith.addf %32, %31 : vector<8x128xf32>
    %c0_15 = arith.constant 0 : index
    %c128_16 = arith.constant 128 : index
    %34 = vector.load %arg3[%c0_15, %c128_16] : memref<8x256xf32, #tpu.memory_space<vmem>>, vector<8x128xf32>
    tpu.vector_store %arg3[%c0_15, %c128_16], %33 {strides = array<i32>} : memref<8x256xf32, #tpu.memory_space<vmem>>, vector<8x128xf32>,
    return
  }
  func.func @transform_0(%arg0: i32) -> (i32, i32) {
    %c0_i32 = arith.constant 0 : i32
    %c0_i32_0 = arith.constant 0 : i32
    return %arg0, %c0_i32 : i32, i32
  }
  func.func @transform_1(%arg0: i32) -> (i32, i32) {
    %c0_i32 = arith.constant 0 : i32
    %c0_i32_0 = arith.constant 0 : i32
    %c0_i32_1 = arith.constant 0 : i32
    return %c0_i32, %c0_i32_0 : i32, i32
  }
  func.func @transform_2(%arg0: i32) -> (i32, i32) {
    %c0_i32 = arith.constant 0 : i32
    %c0_i32_0 = arith.constant 0 : i32
    return %arg0, %c0_i32 : i32, i32
  }
}

</mosaic_0001>

<bundles_post_ra>
// kernel: tpu_custom_call.1
= control target key start
LH: loop header
LB: loop body
LE: loop exit
PB: predicated region body
PF: predicated region fallthrough
CT: control target
= control target key end

     0   :  { %7 = vsyncpa [#allocation3], 0  ;;  %s1004_s0 = inlined_call_operand.hbm [shape: bf16[8,128], index: 0, kind: input, shape index: {}]   ;;  %s1005_s1 = inlined_call_operand.hbm [shape: bf16[648,256], index: 1, kind: input, shape index: {}]   ;;  %s1006_s2 = inlined_call_operand.hbm [shape: f32[8,256], index: 2, kind: output, shape index: {}]  }
   0x1   :  { %8 = vsyncpa [#allocation6], 0 }
   0x2   :  { %9 = vsyncpa [#allocation4], 0  ;;  %s974_s9 = smov [#allocation2]   ;;  %s975_s11 = smov [#allocation5]  }
   0x3   :  { %s16_s10 = sshll.u32 %s974_s9, 4  ;;  %s25_s12 = sshll.u32 %s975_s11, 4  ;;  %s17_s10 = int_to_ptr.vmem [resolvable:$true] %s16_s10  ;;  %s26_s12 = int_to_ptr.vmem [resolvable:$true] %s25_s12 }
   0x4   :  { %s916_s13 = scalar_lea.vmem %s17_s10, 64  ;;  %p921_p1 = scmp.lt.s32.totalorder %s17_s10, %s17_s10 }
   0x5   :  { %p917_p0 = scmp.ne.s32.totalorder %s17_s10, %s916_s13  ;;  %p922_p2 = scmp.lt.s32.totalorder %s916_s13, %s916_s13 }
   0x7   :  { %p923_p3 = por %p922_p2, %p921_p1 }
   0x9   :  { %p924_p4 = pnand %p923_p3, %p917_p0 }
   0xb   :  { %927 = shalt.err (!%p924_p4)
}
   0xc   :  { %19 = dma.hbm_to_vmem [thread:$0]  %s1004_s0, 64, %s17_s10, [#allocation3]  }
   0xd   :  { %s936_s16 = scalar_lea.vmem %s26_s12, 10368  ;;  %p941_p6 = scmp.lt.s32.totalorder %s26_s12, %s26_s12 }
   0xe   :  { %p937_p5 = scmp.ne.s32.totalorder %s26_s12, %s936_s16  ;;  %p942_p7 = scmp.lt.s32.totalorder %s936_s16, %s936_s16 }
  0x10   :  { %p943_p8 = por %p942_p7, %p941_p6 }
  0x12   :  { %p944_p9 = pnand %p943_p8, %p937_p5 }
  0x14   :  { %947 = shalt.err (!%p944_p9)
}
  0x15   :  { %s976_s17 = smov 128   ;;  %s977_s18 = smov 8  }
  0x16   :  { %31 = dma.hbm_to_vmem [thread:$0]  %s1005_s1, 10368, %s26_s12, [#allocation6], %s976_s17, %s976_s17, %s977_s18  }
  0x17   :  { %968 = dma.done.wait [#allocation3], 64  }
  0x18   :  { %969 = vsyncadd [#allocation3], 4294967232 }
  0x19   :  { %970 = dma.done.wait [#allocation6], 10368  }
  0x1a   :  { %971 = vsyncadd [#allocation6], 4294956928  ;;  %v978_v0 = vmov 0   ;;  %v786_v1 = vld [vmem:[#allocation5 + $0x74] ss:$8 sps:$4 sm:$0xff]   ;;  %s979_s0 = smov [#allocation7]  }
  0x1b   :  { %243 = vmatprep.mubr.bf16.mxu0 %v978_v0  ;;  %v788_v2 = vld [vmem:[#allocation5 + $0x70] ss:$8 sps:$4 sm:$0xff]   ;;  %211 = vmatprep.subr.bf16.mxu0 %v786_v1  ;;  %v789_v3 = vld [vmem:[#allocation5 + $0x64] ss:$8 sps:$4 sm:$0xff]   ;;  %v791_v4 = vld [vmem:[#allocation5 + $0x60] ss:$8 sps:$4 sm:$0xff]  }
  0x1c   :  { %212 = vmatpush1.bf16.msra.mxu0 %v788_v2  ;;  %v792_v5 = vld [vmem:[#allocation5 + $0x54] ss:$8 sps:$4 sm:$0xff]   ;;  %v794_v6 = vld [vmem:[#allocation5 + $0x50] ss:$8 sps:$4 sm:$0xff]   ;;  %v795_v7 = vld [vmem:[#allocation5 + $0x44] ss:$8 sps:$4 sm:$0xff]  }
  0x1d   :  { %213 = vmatprep.subr.bf16.mxu0 %v789_v3  ;;  %v797_v8 = vld [vmem:[#allocation5 + $0x40] ss:$8 sps:$4 sm:$0xff]   ;;  %v798_v9 = vld [vmem:[#allocation5 + $0x34] ss:$8 sps:$4 sm:$0xff]   ;;  %v812_v11 = vld [vmem:[#allocation5 + $0xf0] ss:$8 sps:$4 sm:$0xff]  }
  0x1e   :  { %v810_v10 = vld [vmem:[#allocation5 + $0xf4] ss:$8 sps:$4 sm:$0xff]   ;;  %v813_v12 = vld [vmem:[#allocation5 + $0xe4] ss:$8 sps:$4 sm:$0xff]   ;;  %v800_v13 = vld [vmem:[#allocation5 + $0x30] ss:$8 sps:$4 sm:$0xff]  }
  0x1f   :  { %424 = vmatprep.subr.bf16.mxu1 %v810_v10  ;;  %v815_v14 = vld [vmem:[#allocation5 + $0xe0] ss:$8 sps:$4 sm:$0xff]   ;;  %v816_v15 = vld [vmem:[#allocation5 + $0xd4] ss:$8 sps:$4 sm:$0xff]   ;;  %v801_v16 = vld [vmem:[#allocation5 + $0x24] ss:$8 sps:$4 sm:$0xff]  }
  0x20   :  { %214 = vmatpush1.bf16.msra.mxu0 %v791_v4  ;;  %425 = vmatpush1.bf16.msra.mxu1 %v812_v11  ;;  %v803_v17 = vld [vmem:[#allocation5 + $0x20] ss:$8 sps:$4 sm:$0xff]   ;;  %v818_v18 = vld [vmem:[#allocation5 + $0xd0] ss:$8 sps:$4 sm:$0xff]   ;;  %v819_v19 = vld [vmem:[#allocation5 + $0xc4] ss:$8 sps:$4 sm:$0xff]  }
  0x21   :  { %215 = vmatprep.subr.bf16.mxu0 %v792_v5  ;;  %426 = vmatprep.subr.bf16.mxu1 %v813_v12  ;;  %v804_v20 = vld [vmem:[#allocation5 + $0x14] ss:$8 sps:$4 sm:$0xff]   ;;  %v806_v21 = vld [vmem:[#allocation5 + $0x10] ss:$8 sps:$4 sm:$0xff]   ;;  %v821_v22 = vld [vmem:[#allocation5 + $0xc0] ss:$8 sps:$4 sm:$0xff]  }
  0x22   :  { %v822_v23 = vld [vmem:[#allocation5 + $0xb4] ss:$8 sps:$4 sm:$0xff]   ;;  %v807_v24 = vld [vmem:[#allocation5 + $0x4] ss:$8 sps:$4 sm:$0xff]   ;;  %v809_v25 = vld [vmem:[#allocation5] ss:$8 sps:$4 sm:$0xff]  }
  0x23   :  { %v824_v26 = vld [vmem:[#allocation5 + $0xb0] ss:$8 sps:$4 sm:$0xff]   ;;  %v825_v27 = vld [vmem:[#allocation5 + $0xa4] ss:$8 sps:$4 sm:$0xff]   ;;  %v39_v28 = vld [vmem:[#allocation2] sm:$0xf] }
  0x24   :  { %216 = vmatpush1.bf16.msra.mxu0 %v794_v6  ;;  %427 = vmatpush1.bf16.msra.mxu1 %v815_v14  ;;  %v827_v29 = vld [vmem:[#allocation5 + $0xa0] ss:$8 sps:$4 sm:$0xff]   ;;  %v828_v30 = vld [vmem:[#allocation5 + $0x94] ss:$8 sps:$4 sm:$0xff]   ;;  %v830_v31 = vld [vmem:[#allocation5 + $0x90] ss:$8 sps:$4 sm:$0xff]   ;;  %v123_v14 = vlaneseq }
  0x25   :  { %217 = vmatprep.subr.bf16.mxu0 %v795_v7  ;;  %428 = vmatprep.subr.bf16.mxu1 %v816_v15  ;;  %v831_v32 = vld [vmem:[#allocation5 + $0x84] ss:$8 sps:$4 sm:$0xff]   ;;  %v833_v33 = vld [vmem:[#allocation5 + $0x80] ss:$8 sps:$4 sm:$0xff]   ;;  %v834_v34 = vld [vmem:[#allocation5 + $0x174] ss:$8 sps:$4 sm:$0xff]  }
  0x26   :  { %v836_v35 = vld [vmem:[#allocation5 + $0x170] ss:$8 sps:$4 sm:$0xff]   ;;  %v837_v36 = vld [vmem:[#allocation5 + $0x164] ss:$8 sps:$4 sm:$0xff]   ;;  %v839_v37 = vld [vmem:[#allocation5 + $0x160] ss:$8 sps:$4 sm:$0xff]  }
  0x27   :  { %v840_v38 = vld [vmem:[#allocation5 + $0x154] ss:$8 sps:$4 sm:$0xff]   ;;  %v842_v39 = vld [vmem:[#allocation5 + $0x150] ss:$8 sps:$4 sm:$0xff]   ;;  %v843_v40 = vld [vmem:[#allocation5 + $0x144] ss:$8 sps:$4 sm:$0xff]  }
  0x28   :  { %218 = vmatpush1.bf16.msra.mxu0 %v797_v8  ;;  %429 = vmatpush1.bf16.msra.mxu1 %v818_v18  ;;  %v845_v41 = vld [vmem:[#allocation5 + $0x140] ss:$8 sps:$4 sm:$0xff]   ;;  %v846_v42 = vld [vmem:[#allocation5 + $0x134] ss:$8 sps:$4 sm:$0xff]   ;;  %v848_v43 = vld [vmem:[#allocation5 + $0x130] ss:$8 sps:$4 sm:$0xff]  }
  0x29   :  { %219 = vmatprep.subr.bf16.mxu0 %v798_v9  ;;  %430 = vmatprep.subr.bf16.mxu1 %v819_v19  ;;  %v849_v44 = vld [vmem:[#allocation5 + $0x124] ss:$8 sps:$4 sm:$0xff]   ;;  %v851_v45 = vld [vmem:[#allocation5 + $0x120] ss:$8 sps:$4 sm:$0xff]   ;;  %v852_v46 = vld [vmem:[#allocation5 + $0x114] ss:$8 sps:$4 sm:$0xff]  }
  0x2a   :  { %v854_v47 = vld [vmem:[#allocation5 + $0x110] ss:$8 sps:$4 sm:$0xff]   ;;  %v855_v48 = vld [vmem:[#allocation5 + $0x104] ss:$8 sps:$4 sm:$0xff]   ;;  %v857_v49 = vld [vmem:[#allocation5 + $0x100] ss:$8 sps:$4 sm:$0xff]  }
  0x2b   :  { %v858_v50 = vld [vmem:[#allocation5 + $0x1f0] ss:$8 sps:$4 sm:$0xff]   ;;  %v860_v51 = vld [vmem:[#allocation5 + $0x1f4] ss:$8 sps:$4 sm:$0xff]   ;;  %v863_v52 = vld [vmem:[#allocation5 + $0x1e4] ss:$8 sps:$4 sm:$0xff]  }
  0x2c   :  { %220 = vmatpush1.bf16.msra.mxu0 %v800_v13  ;;  %431 = vmatpush1.bf16.msra.mxu1 %v821_v22  ;;  %v861_v53 = vld [vmem:[#allocation5 + $0x1e0] ss:$8 sps:$4 sm:$0xff]   ;;  %v866_v54 = vld [vmem:[#allocation5 + $0x1d4] ss:$8 sps:$4 sm:$0xff]   ;;  %v864_v55 = vld [vmem:[#allocation5 + $0x1d0] ss:$8 sps:$4 sm:$0xff]  }
  0x2d   :  { %221 = vmatprep.subr.bf16.mxu0 %v801_v16  ;;  %432 = vmatprep.subr.bf16.mxu1 %v822_v23  ;;  %v869_v56 = vld [vmem:[#allocation5 + $0x1c4] ss:$8 sps:$4 sm:$0xff]   ;;  %v867_v57 = vld [vmem:[#allocation5 + $0x1c0] ss:$8 sps:$4 sm:$0xff]   ;;  %v872_v58 = vld [vmem:[#allocation5 + $0x1b4] ss:$8 sps:$4 sm:$0xff]  }
  0x2e   :  { %v870_v59 = vld [vmem:[#allocation5 + $0x1b0] ss:$8 sps:$4 sm:$0xff]   ;;  %v875_v60 = vld [vmem:[#allocation5 + $0x1a4] ss:$8 sps:$4 sm:$0xff]   ;;  %v873_v61 = vld [vmem:[#allocation5 + $0x1a0] ss:$8 sps:$4 sm:$0xff]  }
  0x2f   :  { %v878_v62 = vld [vmem:[#allocation5 + $0x194] ss:$8 sps:$4 sm:$0xff]   ;;  %v876_v63 = vld [vmem:[#allocation5 + $0x190] ss:$8 sps:$4 sm:$0xff]   ;;  %v881_v0 = vld [vmem:[#allocation5 + $0x184] ss:$8 sps:$4 sm:$0xff]  }
  0x30   :  { %222 = vmatpush1.bf16.msra.mxu0 %v803_v17  ;;  %433 = vmatpush1.bf16.msra.mxu1 %v824_v26  ;;  %v879_v1 = vld [vmem:[#allocation5 + $0x180] ss:$8 sps:$4 sm:$0xff]   ;;  %v884_v2 = vld [vmem:[#allocation5 + $0x274] ss:$8 sps:$4 sm:$0xff]   ;;  %v882_v3 = vld [vmem:[#allocation5 + $0x270] ss:$8 sps:$4 sm:$0xff]  }
  0x31   :  { %223 = vmatprep.subr.bf16.mxu0 %v804_v20  ;;  %434 = vmatprep.subr.bf16.mxu1 %v825_v27  ;;  %v887_v4 = vld [vmem:[#allocation5 + $0x264] ss:$8 sps:$4 sm:$0xff]   ;;  %v885_v5 = vld [vmem:[#allocation5 + $0x260] ss:$8 sps:$4 sm:$0xff]   ;;  %v890_v6 = vld [vmem:[#allocation5 + $0x254] ss:$8 sps:$4 sm:$0xff]  }
  0x32   :  { %v888_v7 = vld [vmem:[#allocation5 + $0x250] ss:$8 sps:$4 sm:$0xff]   ;;  %v893_v8 = vld [vmem:[#allocation5 + $0x244] ss:$8 sps:$4 sm:$0xff]   ;;  %v891_v9 = vld [vmem:[#allocation5 + $0x240] ss:$8 sps:$4 sm:$0xff]  }
  0x33   :  { %v896_v10 = vld [vmem:[#allocation5 + $0x234] ss:$8 sps:$4 sm:$0xff]   ;;  %v894_v11 = vld [vmem:[#allocation5 + $0x230] ss:$8 sps:$4 sm:$0xff]   ;;  %v899_v12 = vld [vmem:[#allocation5 + $0x224] ss:$8 sps:$4 sm:$0xff]  }
  0x34   :  { %224 = vmatpush1.bf16.msra.mxu0 %v806_v21  ;;  %435 = vmatpush1.bf16.msra.mxu1 %v827_v29  ;;  %v897_v13 = vld [vmem:[#allocation5 + $0x220] ss:$8 sps:$4 sm:$0xff]   ;;  %v124_v15 = vshrl.u32 %v123_v14, 7  ;;  %s690_s1 = sshll.u32 %s979_s0, 4  ;;  %s691_s1 = int_to_ptr.vmem [resolvable:$true] %s690_s1 }
  0x35   :  { %225 = vmatprep.subr.bf16.mxu0 %v807_v24  ;;  %436 = vmatprep.subr.bf16.mxu1 %v828_v30  ;;  %v120_v16 = vld [vmem:[#allocation5 + $0x280] sm:$0xff]  ;;  %s948_s21 = scalar_lea.vmem %s691_s1, 256  ;;  %p953_p11 = scmp.lt.s32.totalorder %s691_s1, %s691_s1 }
  0x36   :  { %v121_v17 = vunpack.c.l.bf16 %v120_v16  ;;  %v125_v18 = vsub.s32 0, %v124_v15  ;;  %v122_v19 = vunpack.c.h.bf16 %v120_v16  ;;  %p949_p10 = scmp.ne.s32.totalorder %s691_s1, %s948_s21  ;;  %p954_p12 = scmp.lt.s32.totalorder %s948_s21, %s948_s21 }
  0x38   :  { %226 = vmatpush1.bf16.msra.mxu0 %v809_v25  ;;  %437 = vmatpush1.bf16.msra.mxu1 %v830_v31  ;;  %v126_v20 = vrot.slane %v121_v17, %v125_v18  ;;  %v130_v21 = vrot.slane %v122_v19, %v125_v18  ;;  %p955_p13 = por %p954_p12, %p953_p11 }
  0x39   :  { %438 = vmatprep.subr.bf16.mxu1 %v831_v32  ;;  %637 = vmatprep.subr.bf16.mxu0 %v860_v51  ;;  %v902_v32 = vld [vmem:[#allocation5 + $0x214] ss:$8 sps:$4 sm:$0xff]  }
  0x3a   :  { %p956_p0 = pnand %p955_p13, %p949_p10 }
  0x3b   :  { %244 = vmatmul.mubr.bf16.vlgmr.msra.gmra.mxu0 %v39_v28 }
  0x3c   :  { %439 = vmatpush1.bf16.msra.mxu1 %v833_v33  ;;  %638 = vmatpush1.bf16.msra.mxu0 %v858_v50  ;;  %v900_v33 = vld [vmem:[#allocation5 + $0x210] ss:$8 sps:$4 sm:$0xff]  }
  0x3d   :  { %440 = vmatprep.subr.bf16.mxu1 %v834_v34  ;;  %639 = vmatprep.subr.bf16.mxu0 %v863_v52  ;;  %v905_v34 = vld [vmem:[#allocation5 + $0x204] ss:$8 sps:$4 sm:$0xff]  }
  0x40   :  { %441 = vmatpush2.bf16.msra.mxu1 %v836_v35  ;;  %640 = vmatpush1.bf16.msra.mxu0 %v861_v53  ;;  %v903_v35 = vld [vmem:[#allocation5 + $0x200] ss:$8 sps:$4 sm:$0xff]  }
  0x41   :  { %442 = vmatprep.subr.bf16.mxu1 %v837_v36  ;;  %641 = vmatprep.subr.bf16.mxu0 %v866_v54  ;;  %v258_v36 = vsub.s32 1, %v124_v15 }
  0x44   :  { %443 = vmatpush2.bf16.msra.mxu1 %v839_v37  ;;  %642 = vmatpush1.bf16.msra.mxu0 %v864_v55  ;;  %v259_v37 = vrot.slane %v121_v17, %v258_v36 }
  0x45   :  { %444 = vmatprep.subr.bf16.mxu1 %v840_v38  ;;  %643 = vmatprep.subr.bf16.mxu0 %v869_v56  ;;  %v263_v38 = vrot.slane %v122_v19, %v258_v36 }
  0x48   :  { %445 = vmatpush2.bf16.msra.mxu1 %v842_v39  ;;  %644 = vmatpush1.bf16.msra.mxu0 %v867_v57 }
  0x49   :  { %446 = vmatprep.subr.bf16.mxu1 %v843_v40  ;;  %645 = vmatprep.subr.bf16.mxu0 %v872_v58 }
  0x4c   :  { %447 = vmatpush2.bf16.msra.mxu1 %v845_v41  ;;  %646 = vmatpush1.bf16.msra.mxu0 %v870_v59 }
  0x4d   :  { %448 = vmatprep.subr.bf16.mxu1 %v846_v42  ;;  %647 = vmatprep.subr.bf16.mxu0 %v875_v60 }
  0x50   :  { %449 = vmatpush2.bf16.msra.mxu1 %v848_v43  ;;  %648 = vmatpush1.bf16.msra.mxu0 %v873_v61 }
  0x51   :  { %450 = vmatprep.subr.bf16.mxu1 %v849_v44  ;;  %649 = vmatprep.subr.bf16.mxu0 %v878_v62 }
  0x54   :  { %451 = vmatpush2.bf16.msra.mxu1 %v851_v45  ;;  %650 = vmatpush1.bf16.msra.mxu0 %v876_v63 }
  0x55   :  { %452 = vmatprep.subr.bf16.mxu1 %v852_v46  ;;  %651 = vmatprep.subr.bf16.mxu0 %v881_v0 }
  0x58   :  { %453 = vmatpush2.bf16.msra.mxu1 %v854_v47  ;;  %652 = vmatpush1.bf16.msra.mxu0 %v879_v1 }
  0x59   :  { %454 = vmatprep.subr.bf16.mxu1 %v855_v48  ;;  %653 = vmatprep.subr.bf16.mxu0 %v884_v2 }
  0x5c   :  { %455 = vmatpush2.bf16.msra.mxu1 %v857_v49  ;;  %654 = vmatpush2.bf16.msra.mxu0 %v882_v3  ;;  %v471_v49 = vsub.s32 2, %v124_v15 }
  0x5d   :  { %655 = vmatprep.subr.bf16.mxu0 %v887_v4 }
  0x5e   :  { %v472_v50 = vrot.slane %v121_v17, %v471_v49  ;;  %v476_v51 = vrot.slane %v122_v19, %v471_v49 }
  0x60   :  { %656 = vmatpush2.bf16.msra.mxu0 %v885_v5 }
  0x61   :  { %657 = vmatprep.subr.bf16.mxu0 %v890_v6 }
  0x64   :  { %658 = vmatpush2.bf16.msra.mxu0 %v888_v7 }
  0x65   :  { %659 = vmatprep.subr.bf16.mxu0 %v893_v8 }
  0x68   :  { %660 = vmatpush2.bf16.msra.mxu0 %v891_v9 }
  0x69   :  { %661 = vmatprep.subr.bf16.mxu0 %v896_v10 }
  0x6c   :  { %662 = vmatpush2.bf16.msra.mxu0 %v894_v11 }
  0x6d   :  { %663 = vmatprep.subr.bf16.mxu0 %v899_v12 }
  0x70   :  { %664 = vmatpush2.bf16.msra.mxu0 %v897_v13 }
  0x71   :  { %665 = vmatprep.subr.bf16.mxu0 %v902_v32 }
  0x74   :  { %666 = vmatpush2.bf16.msra.mxu0 %v900_v33 }
  0x75   :  { %667 = vmatprep.subr.bf16.mxu0 %v905_v34 }
  0x78   :  { %668 = vmatpush2.bf16.msra.mxu0 %v903_v35 }
  0xfb   :  { %v245_v22 = vpop.f32.mrf.mxu0 }
  0xfc   :  { %v246_v23 = vadd.f32 %v245_v22, %v126_v20 }
  0xfd   :  { %v247_v24 = vpop.f32.mrf.mxu0 }
  0xfe   :  { %v248_v25 = vadd.f32 %v247_v24, %v130_v21  ;;  %v252_v26 = vmax.f32 %v246_v23, 0.0 }
  0xff   :  { %v249_v27 = vpop.f32.mrf.mxu0 }
 0x100   :  { %v253_v28 = vmax.f32 %v248_v25, 0.0  ;;  %v254_v31 = vpack.c.bf16 %v252_v26, %v252_v26 }
 0x101   :  { %v250_v29 = vpop.f32.mrf.mxu0 }
 0x102   :  { %v255_v30 = vpack.c.bf16 %v253_v28, %v253_v28 }
 0x104   :  { %456 = vmatprep.mubr.bf16.mxu1 %v255_v30 }
 0x105   :  { %457 = vmatmul.mubr.bf16.vlgmr.msra.gmra.mxu1 %v254_v31 }
 0x1c5   :  { %v458_v39 = vpop.f32.mrf.mxu1 }
 0x1c6   :  { %v459_v40 = vadd.f32 %v458_v39, %v259_v37 }
 0x1c7   :  { %v460_v41 = vpop.f32.mrf.mxu1 }
 0x1c8   :  { %v461_v42 = vadd.f32 %v460_v41, %v263_v38  ;;  %v465_v43 = vmax.f32 %v459_v40, 0.0 }
 0x1c9   :  { %v462_v44 = vpop.f32.mrf.mxu1 }
 0x1ca   :  { %v466_v45 = vmax.f32 %v461_v42, 0.0  ;;  %v467_v48 = vpack.c.bf16 %v465_v43, %v465_v43 }
 0x1cb   :  { %v463_v46 = vpop.f32.mrf.mxu1 }
 0x1cc   :  { %v468_v47 = vpack.c.bf16 %v466_v45, %v466_v45 }
 0x1ce   :  { %669 = vmatprep.mubr.bf16.mxu0 %v468_v47 }
 0x1cf   :  { %670 = vmatmul.mubr.bf16.vlgmr.msra.gmra.mxu0 %v467_v48 }
 0x28f   :  { %v671_v52 = vpop.f32.mrf.mxu0 }
 0x290   :  { %v672_v53 = vadd.f32 %v671_v52, %v472_v50 }
 0x291   :  { %v673_v54 = vpop.f32.mrf.mxu0 }
 0x292   :  { %678 = vst [vmem:[#allocation7] sm:$0xff] %v672_v53  ;;  %v674_v55 = vadd.f32 %v673_v54, %v476_v51 }
 0x293   :  { %v675_v56 = vpop.f32.mrf.mxu0 }
 0x294   :  { %906 = vtanh.f32 %v674_v55 }
 0x295   :  { %v676_v57 = vpop.f32.mrf.mxu0 }
 0x2a1   :  { %v907_v58 = vpop.eup %906 }
 0x2a2   :  { %v680_v59 = vadd.f32 1.0, %v907_v58 }
 0x2a4   :  { %v681_v60 = vmul.f32 3.5, %v680_v59 }
 0x2a6   :  { %v682_v61 = vadd.f32 -5.0, %v681_v60 }
 0x2a8   :  { %683 = vst [vmem:[#allocation7 + $0x8] sm:$0xff] %v682_v61 }
 0x2a9   :  { %959 = shalt.err (!%p956_p0)
}
 0x2aa   :  { %693 = dma.vmem_to_hbm [thread:$0]  %s691_s1, 256, %s1006_s2, [#allocation4]  }
 0x2ab   :  { %972 = dma.done.wait [#allocation4], 256  }
 0x2ac   :  { %973 = vsyncadd [#allocation4], 4294967040 }
 0x2ad   :  { %697 = vsyncpa [#allocation3], 1 }
 0x2ae   :  { %698 = vsyncpa [#allocation6], 1 }
 0x2af   :  { %699 = vsyncpa [#allocation4], 1 }

</bundles_post_ra>
